<compile_context>
chip_gen: v7x
topology: tpu7x:2x2x1
jax: 0.10.0
libtpu: 0.0.40
codegen_flags: <defaults>
</compile_context>

<pallas_src>
import functools

import jax
import jax.numpy as jnp
from jax.experimental import pallas as pl


# ----------------------------- Pallas kernel ------------------------------- #
def _decoder_kernel(num_samples,
                    zT_ref,
                    w1_ref, b1_ref, g1_ref, be1_ref,
                    w2_ref, b2_ref, g2_ref, be2_ref,
                    w3_ref, b3_ref,
                    out_ref):
    eps = jnp.float32(1e-5)
    slope = jnp.float32(0.01)

    def bn_lrelu(h, g, be):
        # Training-mode BatchNorm1d over the batch axis (= lane axis here).
        mu = jnp.mean(h, axis=1, keepdims=True)
        c = h - mu
        var = jnp.mean(c * c, axis=1, keepdims=True)
        h = c * jax.lax.rsqrt(var + eps) * g + be
        return jnp.where(h > 0, h, slope * h)

    zT = zT_ref[...]                                        # (latent_dim, B)

    # Linear 1 + BN + LeakyReLU            -> (h_n, B)
    h = jnp.dot(w1_ref[...], zT, preferred_element_type=jnp.float32) + b1_ref[...]
    h = bn_lrelu(h, g1_ref[...], be1_ref[...])

    # Linear 2 + BN + LeakyReLU            -> (h_n, B)
    h = jnp.dot(w2_ref[...], h, preferred_element_type=jnp.float32) + b2_ref[...]
    h = bn_lrelu(h, g2_ref[...], be2_ref[...])

    # Linear 3 (reconstruction, transposed) -> (input_len, B)
    recon = jnp.dot(w3_ref[...], h, preferred_element_type=jnp.float32) + b3_ref[...]

    # Per-column (per batch element) softmax over the first num_samples
    # feature rows, computed over the full tile with a row mask.
    row = jax.lax.broadcasted_iota(jnp.int32, recon.shape, 0)
    is_depth = row < num_samples
    d = jnp.where(is_depth, recon, jnp.float32(-1e30))
    m = jnp.max(d, axis=0, keepdims=True)
    e = jnp.where(is_depth, jnp.exp(d - m), jnp.float32(0.0))
    denom = jnp.sum(e, axis=0, keepdims=True)
    sm = e / denom                                          # exact divide
    proc = jnp.where(is_depth, sm, recon)                   # [softmax | tnf]

    # Consolidated, lane-dense output: two full 128-lane unmasked slab stores.
    out_ref[0] = recon
    out_ref[1] = proc


# ------------------------------ JAX wrapper -------------------------------- #
def decoder_forward(z, params, num_samples):
    """z: (B, latent_dim) float32.  Returns (reconstruction, depths_out, tnf_out)."""
    (w1, b1, g1, be1, w2, b2, g2, be2, w3, b3) = params
    B = z.shape[0]
    input_len = w3.shape[0]

    zT = z.T  # (latent_dim, B): batch on lanes, lane-dense kernel input

    inputs = (zT, w1, b1, g1, be1, w2, b2, g2, be2, w3, b3)

    def full_spec(a):
        # whole array resident in VMEM, single grid point
        return pl.BlockSpec(a.shape, lambda: (0,) * a.ndim)

    out = pl.pallas_call(
        functools.partial(_decoder_kernel, num_samples),
        out_shape=jax.ShapeDtypeStruct((2, input_len, B), jnp.float32),
        in_specs=[full_spec(a) for a in inputs],
        out_specs=pl.BlockSpec((2, input_len, B), lambda: (0, 0, 0)),
    )(*inputs)

    reconstruction = out[0].T                       # (B, input_len)
    depths_out = out[1, :num_samples, :].T          # (B, num_samples)
    tnf_out = out[1, num_samples:, :].T             # (B, input_len - num_samples)
    return reconstruction, depths_out, tnf_out


# --------------------------- deterministic init ----------------------------- #
def init_decoder_params(key, latent_dim, h_n, input_len):
    """PyTorch-Linear-style uniform(-1/sqrt(fan_in), 1/sqrt(fan_in)) init;
    BatchNorm gamma=1, beta=0.  Weights in torch (out, in) layout, biases /
    BN params as (out, 1) columns (features on sublanes)."""
    ks = jax.random.split(key, 6)

    def linear(kw, kb, fan_in, fan_out):
        bound = 1.0 / jnp.sqrt(jnp.float32(fan_in))
        w = jax.random.uniform(kw, (fan_out, fan_in), jnp.float32, -bound, bound)
        b = jax.random.uniform(kb, (fan_out, 1), jnp.float32, -bound, bound)
        return w, b

    w1, b1 = linear(ks[0], ks[1], latent_dim, h_n)
    w2, b2 = linear(ks[2], ks[3], h_n, h_n)
    w3, b3 = linear(ks[4], ks[5], h_n, input_len)
    g1 = jnp.ones((h_n, 1), jnp.float32)
    be1 = jnp.zeros((h_n, 1), jnp.float32)
    g2 = jnp.ones((h_n, 1), jnp.float32)
    be2 = jnp.zeros((h_n, 1), jnp.float32)
    return (w1, b1, g1, be1, w2, b2, g2, be2, w3, b3)


# ---------------------------- pure-JAX reference ----------------------------- #
def decoder_reference(z, params, num_samples):
    (w1, b1, g1, be1, w2, b2, g2, be2, w3, b3) = params
    eps = 1e-5

    def bn_lrelu(h, g, be):
        mu = jnp.mean(h, axis=0, keepdims=True)
        var = jnp.mean((h - mu) ** 2, axis=0, keepdims=True)
        h = (h - mu) / jnp.sqrt(var + eps) * g + be
        return jnp.where(h > 0, h, 0.01 * h)

    h = bn_lrelu(z @ w1.T + b1.T, g1.T, be1.T)
    h = bn_lrelu(h @ w2.T + b2.T, g2.T, be2.T)
    recon = h @ w3.T + b3.T
    depths = jax.nn.softmax(recon[:, :num_samples], axis=1)
    return recon, depths, recon[:, num_samples:]


# ---------------------------------- main ------------------------------------ #
if __name__ == "__main__":
    # Shapes consistent with the module: latent_dim (opt.l_d) = 16,
    # h_n (opt.h_n) = 32, num_samples = depths.shape[1] = 6, tnf features = 10.
    # B = 128 exactly fills the lane axis in the batch-on-lanes layout.
    B = 128
    latent_dim = 16
    h_n = 32
    num_samples = 6
    tnf_dim = 10
    input_len = num_samples + tnf_dim

    key = jax.random.PRNGKey(0)
    k_z, k_p = jax.random.split(key)
    z = jax.random.normal(k_z, (B, latent_dim), jnp.float32)
    params = init_decoder_params(k_p, latent_dim, h_n, input_len)

    recon, depths_out, tnf_out = decoder_forward(z, params, num_samples)
    jax.block_until_ready((recon, depths_out, tnf_out))

    # shape checks
    assert recon.shape == (B, input_len)
    assert depths_out.shape == (B, num_samples)
    assert tnf_out.shape == (B, tnf_dim)

    # softmax rows sum to 1 (exact divide in the kernel)
    assert jnp.allclose(jnp.sum(depths_out, axis=1), 1.0, atol=1e-4)

    # match the pure-JAX reference
    r_ref, d_ref, t_ref = decoder_reference(z, params, num_samples)
    assert jnp.allclose(recon, r_ref, atol=2e-3, rtol=2e-3)
    assert jnp.allclose(depths_out, d_ref, atol=2e-3, rtol=2e-3)
    assert jnp.allclose(tnf_out, t_ref, atol=2e-3, rtol=2e-3)

    print("KERNEL_OK")
</pallas_src>

<mosaic_0001>
module attributes {stable_mosaic.version = 11 : i64} {
  func.func @_decoder_kernel(%arg0: memref<16x128xf32, #tpu.memory_space<vmem>>, %arg1: memref<32x16xf32, #tpu.memory_space<vmem>>, %arg2: memref<32x1xf32, #tpu.memory_space<vmem>>, %arg3: memref<32x1xf32, #tpu.memory_space<vmem>>, %arg4: memref<32x1xf32, #tpu.memory_space<vmem>>, %arg5: memref<32x32xf32, #tpu.memory_space<vmem>>, %arg6: memref<32x1xf32, #tpu.memory_space<vmem>>, %arg7: memref<32x1xf32, #tpu.memory_space<vmem>>, %arg8: memref<32x1xf32, #tpu.memory_space<vmem>>, %arg9: memref<16x32xf32, #tpu.memory_space<vmem>>, %arg10: memref<16x1xf32, #tpu.memory_space<vmem>>, %arg11: memref<2x16x128xf32, #tpu.memory_space<vmem>>) attributes {dimension_semantics = [], scalar_prefetch = 0 : i64, scratch_operands = 0 : i64, tpu.core_type = #tpu.core_type<tc>} {
    %c0 = arith.constant 0 : index
    %c0_0 = arith.constant 0 : index
    %0 = vector.load %arg0[%c0, %c0_0] : memref<16x128xf32, #tpu.memory_space<vmem>>, vector<16x128xf32>
    %c0_1 = arith.constant 0 : index
    %c0_2 = arith.constant 0 : index
    %1 = vector.load %arg1[%c0_1, %c0_2] : memref<32x16xf32, #tpu.memory_space<vmem>>, vector<32x16xf32>
    %cst = arith.constant dense<0.000000e+00> : vector<32x128xf32>
    %2 = tpu.matmul %1, %0, %cst {dimension_numbers = #tpu.dot_dimension_numbers<[1], [0], [0], [1], [0, 0, 1, 1], [], []>} : vector<32x16xf32>, vector<16x128xf32>, vector<32x128xf32> -> vector<32x128xf32>
    %c0_3 = arith.constant 0 : index
    %c0_4 = arith.constant 0 : index
    %3 = vector.load %arg2[%c0_3, %c0_4] : memref<32x1xf32, #tpu.memory_space<vmem>>, vector<32x1xf32>
    %4 = vector.broadcast %3 : vector<32x1xf32> to vector<32x128xf32>
    %5 = arith.addf %2, %4 : vector<32x128xf32>
    %c0_5 = arith.constant 0 : index
    %c0_6 = arith.constant 0 : index
    %6 = vector.load %arg3[%c0_5, %c0_6] : memref<32x1xf32, #tpu.memory_space<vmem>>, vector<32x1xf32>
    %c0_7 = arith.constant 0 : index
    %c0_8 = arith.constant 0 : index
    %7 = vector.load %arg4[%c0_7, %c0_8] : memref<32x1xf32, #tpu.memory_space<vmem>>, vector<32x1xf32>
    %cst_9 = arith.constant dense<0.000000e+00> : vector<32xf32>
    %8 = vector.multi_reduction <add>, %5, %cst_9 [1] : vector<32x128xf32> to vector<32xf32>
    %9 = vector.shape_cast %8 : vector<32xf32> to vector<32x1xf32>
    %cst_10 = arith.constant 1.280000e+02 : f32
    %10 = vector.broadcast %cst_10 : f32 to vector<32x1xf32>
    %11 = arith.divf %9, %10 : vector<32x1xf32>
    %12 = vector.broadcast %11 : vector<32x1xf32> to vector<32x128xf32>
    %13 = arith.subf %5, %12 : vector<32x128xf32>
    %14 = arith.mulf %13, %13 : vector<32x128xf32>
    %cst_11 = arith.constant dense<0.000000e+00> : vector<32xf32>
    %15 = vector.multi_reduction <add>, %14, %cst_11 [1] : vector<32x128xf32> to vector<32xf32>
    %16 = vector.shape_cast %15 : vector<32xf32> to vector<32x1xf32>
    %cst_12 = arith.constant 1.280000e+02 : f32
    %17 = vector.broadcast %cst_12 : f32 to vector<32x1xf32>
    %18 = arith.divf %16, %17 : vector<32x1xf32>
    %cst_13 = arith.constant 9.99999974E-6 : f32
    %19 = vector.broadcast %cst_13 : f32 to vector<32x1xf32>
    %20 = arith.addf %18, %19 : vector<32x1xf32>
    %21 = math.rsqrt %20 : vector<32x1xf32>
    %22 = vector.broadcast %21 : vector<32x1xf32> to vector<32x128xf32>
    %23 = arith.mulf %13, %22 : vector<32x128xf32>
    %24 = vector.broadcast %6 : vector<32x1xf32> to vector<32x128xf32>
    %25 = arith.mulf %23, %24 : vector<32x128xf32>
    %26 = vector.broadcast %7 : vector<32x1xf32> to vector<32x128xf32>
    %27 = arith.addf %25, %26 : vector<32x128xf32>
    %cst_14 = arith.constant 0.000000e+00 : f32
    %28 = vector.broadcast %cst_14 : f32 to vector<32x128xf32>
    %29 = arith.cmpf ogt, %27, %28 : vector<32x128xf32>
    %cst_15 = arith.constant 0.00999999977 : f32
    %30 = vector.broadcast %cst_15 : f32 to vector<32x128xf32>
    %31 = arith.mulf %30, %27 : vector<32x128xf32>
    %32 = arith.select %29, %27, %31 : vector<32x128xi1>, vector<32x128xf32>
    %c0_16 = arith.constant 0 : index
    %c0_17 = arith.constant 0 : index
    %33 = vector.load %arg5[%c0_16, %c0_17] : memref<32x32xf32, #tpu.memory_space<vmem>>, vector<32x32xf32>
    %cst_18 = arith.constant dense<0.000000e+00> : vector<32x128xf32>
    %34 = tpu.matmul %33, %32, %cst_18 {dimension_numbers = #tpu.dot_dimension_numbers<[1], [0], [0], [1], [0, 0, 1, 1], [], []>} : vector<32x32xf32>, vector<32x128xf32>, vector<32x128xf32> -> vector<32x128xf32>
    %c0_19 = arith.constant 0 : index
    %c0_20 = arith.constant 0 : index
    %35 = vector.load %arg6[%c0_19, %c0_20] : memref<32x1xf32, #tpu.memory_space<vmem>>, vector<32x1xf32>
    %36 = vector.broadcast %35 : vector<32x1xf32> to vector<32x128xf32>
    %37 = arith.addf %34, %36 : vector<32x128xf32>
    %c0_21 = arith.constant 0 : index
    %c0_22 = arith.constant 0 : index
    %38 = vector.load %arg7[%c0_21, %c0_22] : memref<32x1xf32, #tpu.memory_space<vmem>>, vector<32x1xf32>
    %c0_23 = arith.constant 0 : index
    %c0_24 = arith.constant 0 : index
    %39 = vector.load %arg8[%c0_23, %c0_24] : memref<32x1xf32, #tpu.memory_space<vmem>>, vector<32x1xf32>
    %cst_25 = arith.constant dense<0.000000e+00> : vector<32xf32>
    %40 = vector.multi_reduction <add>, %37, %cst_25 [1] : vector<32x128xf32> to vector<32xf32>
    %41 = vector.shape_cast %40 : vector<32xf32> to vector<32x1xf32>
    %cst_26 = arith.constant 1.280000e+02 : f32
    %42 = vector.broadcast %cst_26 : f32 to vector<32x1xf32>
    %43 = arith.divf %41, %42 : vector<32x1xf32>
    %44 = vector.broadcast %43 : vector<32x1xf32> to vector<32x128xf32>
    %45 = arith.subf %37, %44 : vector<32x128xf32>
    %46 = arith.mulf %45, %45 : vector<32x128xf32>
    %cst_27 = arith.constant dense<0.000000e+00> : vector<32xf32>
    %47 = vector.multi_reduction <add>, %46, %cst_27 [1] : vector<32x128xf32> to vector<32xf32>
    %48 = vector.shape_cast %47 : vector<32xf32> to vector<32x1xf32>
    %cst_28 = arith.constant 1.280000e+02 : f32
    %49 = vector.broadcast %cst_28 : f32 to vector<32x1xf32>
    %50 = arith.divf %48, %49 : vector<32x1xf32>
    %cst_29 = arith.constant 9.99999974E-6 : f32
    %51 = vector.broadcast %cst_29 : f32 to vector<32x1xf32>
    %52 = arith.addf %50, %51 : vector<32x1xf32>
    %53 = math.rsqrt %52 : vector<32x1xf32>
    %54 = vector.broadcast %53 : vector<32x1xf32> to vector<32x128xf32>
    %55 = arith.mulf %45, %54 : vector<32x128xf32>
    %56 = vector.broadcast %38 : vector<32x1xf32> to vector<32x128xf32>
    %57 = arith.mulf %55, %56 : vector<32x128xf32>
    %58 = vector.broadcast %39 : vector<32x1xf32> to vector<32x128xf32>
    %59 = arith.addf %57, %58 : vector<32x128xf32>
    %cst_30 = arith.constant 0.000000e+00 : f32
    %60 = vector.broadcast %cst_30 : f32 to vector<32x128xf32>
    %61 = arith.cmpf ogt, %59, %60 : vector<32x128xf32>
    %cst_31 = arith.constant 0.00999999977 : f32
    %62 = vector.broadcast %cst_31 : f32 to vector<32x128xf32>
    %63 = arith.mulf %62, %59 : vector<32x128xf32>
    %64 = arith.select %61, %59, %63 : vector<32x128xi1>, vector<32x128xf32>
    %c0_32 = arith.constant 0 : index
    %c0_33 = arith.constant 0 : index
    %65 = vector.load %arg9[%c0_32, %c0_33] : memref<16x32xf32, #tpu.memory_space<vmem>>, vector<16x32xf32>
    %cst_34 = arith.constant dense<0.000000e+00> : vector<16x128xf32>
    %66 = tpu.matmul %65, %64, %cst_34 {dimension_numbers = #tpu.dot_dimension_numbers<[1], [0], [0], [1], [0, 0, 1, 1], [], []>} : vector<16x32xf32>, vector<32x128xf32>, vector<16x128xf32> -> vector<16x128xf32>
    %c0_35 = arith.constant 0 : index
    %c0_36 = arith.constant 0 : index
    %67 = vector.load %arg10[%c0_35, %c0_36] : memref<16x1xf32, #tpu.memory_space<vmem>>, vector<16x1xf32>
    %68 = vector.broadcast %67 : vector<16x1xf32> to vector<16x128xf32>
    %69 = arith.addf %66, %68 : vector<16x128xf32>
    %70 = tpu.iota {dimensions = array<i32: 0>} : vector<16x128xi32>
    %c6_i32 = arith.constant 6 : i32
    %71 = vector.broadcast %c6_i32 : i32 to vector<16x128xi32>
    %72 = arith.cmpi slt, %70, %71 : vector<16x128xi32>
    %cst_37 = arith.constant -1.000000e+30 : f32
    %73 = vector.broadcast %cst_37 : f32 to vector<16x128xf32>
    %74 = arith.select %72, %69, %73 : vector<16x128xi1>, vector<16x128xf32>
    %cst_38 = arith.constant dense<0xFF800000> : vector<128xf32>
    %75 = vector.multi_reduction <maximumf>, %74, %cst_38 [0] : vector<16x128xf32> to vector<128xf32>
    %76 = vector.shape_cast %75 : vector<128xf32> to vector<1x128xf32>
    %77 = vector.broadcast %76 : vector<1x128xf32> to vector<16x128xf32>
    %78 = arith.subf %74, %77 : vector<16x128xf32>
    %79 = math.exp %78 : vector<16x128xf32>
    %cst_39 = arith.constant 0.000000e+00 : f32
    %80 = vector.broadcast %cst_39 : f32 to vector<16x128xf32>
    %81 = arith.select %72, %79, %80 : vector<16x128xi1>, vector<16x128xf32>
    %cst_40 = arith.constant dense<0.000000e+00> : vector<128xf32>
    %82 = vector.multi_reduction <add>, %81, %cst_40 [0] : vector<16x128xf32> to vector<128xf32>
    %83 = vector.shape_cast %82 : vector<128xf32> to vector<1x128xf32>
    %84 = vector.broadcast %83 : vector<1x128xf32> to vector<16x128xf32>
    %85 = arith.divf %81, %84 : vector<16x128xf32>
    %86 = arith.select %72, %85, %69 : vector<16x128xi1>, vector<16x128xf32>
    %c0_41 = arith.constant 0 : index
    %c0_42 = arith.constant 0 : index
    %c0_43 = arith.constant 0 : index
    %87 = vector.load %arg11[%c0_41, %c0_42, %c0_43] : memref<2x16x128xf32, #tpu.memory_space<vmem>>, vector<1x16x128xf32>
    %88 = vector.shape_cast %87 : vector<1x16x128xf32> to vector<16x128xf32>
    %89 = vector.shape_cast %69 : vector<16x128xf32> to vector<1x16x128xf32>
    tpu.vector_store %arg11[%c0_41, %c0_42, %c0_43], %89 {strides = array<i32>} : memref<2x16x128xf32, #tpu.memory_space<vmem>>, vector<1x16x128xf32>,
    %c1 = arith.constant 1 : index
    %c0_44 = arith.constant 0 : index
    %c0_45 = arith.constant 0 : index
    %90 = vector.load %arg11[%c1, %c0_44, %c0_45] : memref<2x16x128xf32, #tpu.memory_space<vmem>>, vector<1x16x128xf32>
    %91 = vector.shape_cast %90 : vector<1x16x128xf32> to vector<16x128xf32>
    %92 = vector.shape_cast %86 : vector<16x128xf32> to vector<1x16x128xf32>
    tpu.vector_store %arg11[%c1, %c0_44, %c0_45], %92 {strides = array<i32>} : memref<2x16x128xf32, #tpu.memory_space<vmem>>, vector<1x16x128xf32>,
    return
  }
}

</mosaic_0001>

<bundles_post_ra>
// kernel: tpu_custom_call.1
= control target key start
LH: loop header
LB: loop body
LE: loop exit
PB: predicated region body
PF: predicated region fallthrough
CT: control target
= control target key end

     0   :  { %vm69_vm0 = vcmask 130048   ;;  %v803_v4 = vmov 0   ;;  %s1006_s0 = inlined_call_operand.vmem [shape: f32[16,128], index: 0, kind: input, shape index: {}]   ;;  %s1007_s1 = inlined_call_operand.vmem [shape: f32[32,16], index: 1, kind: input, shape index: {}]   ;;  %s1008_s2 = inlined_call_operand.vmem [shape: f32[32,1], index: 2, kind: input, shape index: {}]   ;;  %s1009_s3 = inlined_call_operand.vmem [shape: f32[32,1], index: 3, kind: input, shape index: {}]   ;;  %s1010_s4 = inlined_call_operand.vmem [shape: f32[32,1], index: 4, kind: input, shape index: {}]   ;;  %s1011_s5 = inlined_call_operand.vmem [shape: f32[32,32], index: 5, kind: input, shape index: {}]   ;;  %s1012_s6 = inlined_call_operand.vmem [shape: f32[32,1], index: 6, kind: input, shape index: {}]   ;;  %s1013_s7 = inlined_call_operand.vmem [shape: f32[32,1], index: 7, kind: input, shape index: {}]   ;;  %s1014_s8 = inlined_call_operand.vmem [shape: f32[32,1], index: 8, kind: input, shape index: {}]   ;;  %s1015_s9 = inlined_call_operand.vmem [shape: f32[16,32], index: 9, kind: input, shape index: {}]   ;;  %s1016_s10 = inlined_call_operand.vmem [shape: f32[16,1], index: 10, kind: input, shape index: {}]   ;;  %s1017_s11 = inlined_call_operand.hbm [shape: f32[2,16,128], index: 11, kind: output, shape index: {}]  }
   0x1   :  { %v39_v0 = vld [vmem:[%s1006_s0] sm:$0xff]  ;;  %v40_v1 = vld [vmem:[%s1006_s0 + $0x8] sm:$0xff]  ;;  %757 = vset.pattern.permute.xlu0 %v803_v4  ;;  %758 = vset.pattern.permute.xlu1 %v803_v4  ;;  %v47_v6 = vld [vmem:[%s1008_s2 + $0x10] sm:$0xff] }
   0x2   :  { %v41_v2 = vld [vmem:[%s1007_s1] sm:$0xff]  ;;  %v733_v3 = vpack.c.bf16 %v40_v1, %v39_v0 }
   0x3   :  { %702 = vmatprep.mubr.msk.f32.mxu0 %vm69_vm0, %v41_v2  ;;  %v45_v5 = vld [vmem:[%s1008_s2] sm:$0xff] }
   0x4   :  { %734 = vmatprep.subr.bf16.mxu0 %v733_v3  ;;  %51 = vperm.xlu0 %757, %v45_v5  }
   0x5   :  { %16 = vsyncpa [#allocation3], 0  ;;  %736 = vmatpush3.bf16.msra.mxu0 %v733_v3  ;;  %v42_v7 = vld [vmem:[%s1007_s1 + $0x8] sm:$0xff]  ;;  %61 = vperm.xlu1 %758, %v47_v6   ;;  %v43_v9 = vld [vmem:[%s1007_s1 + $0x10] sm:$0xff]  ;;  %vm308_vm1 = vcmask 261120  }
   0x6   :  { %v46_v8 = vld [vmem:[%s1008_s2 + $0x8] sm:$0xff]  ;;  %v48_v10 = vld [vmem:[%s1008_s2 + $0x18] sm:$0xff]  ;;  %v167_v24 = vld [vmem:[%s1009_s3] sm:$0xff] }
   0x7   :  { %v44_v11 = vld [vmem:[%s1007_s1 + $0x18] sm:$0xff]  ;;  %v171_v25 = vld [vmem:[%s1010_s4] sm:$0xff]  ;;  %v172_v26 = vld [vmem:[%s1010_s4 + $0x8] sm:$0xff] }
   0x8   :  { %703 = vmatmul.mubr.msk.f32.vlgmr.msra.gmra.mrb[0].mxu0 %vm69_vm0, %v42_v7  ;;  %56 = vperm.xlu0 %757, %v46_v8   ;;  %v170_v27 = vld [vmem:[%s1009_s3 + $0x18] sm:$0xff]  ;;  %v168_v28 = vld [vmem:[%s1009_s3 + $0x8] sm:$0xff]  ;;  %v169_v29 = vld [vmem:[%s1009_s3 + $0x10] sm:$0xff] }
   0x9   :  { %705 = vmatprep.mubr.msk.f32.mxu0 %vm69_vm0, %v43_v9  ;;  %66 = vperm.xlu1 %758, %v48_v10   ;;  %v174_v46 = vld [vmem:[%s1010_s4 + $0x18] sm:$0xff]  ;;  %v285_v47 = vld [vmem:[%s1012_s6 + $0x8] sm:$0xff]  ;;  %v173_v49 = vld [vmem:[%s1010_s4 + $0x10] sm:$0xff] }
   0xa   :  { %v287_v48 = vld [vmem:[%s1012_s6 + $0x18] sm:$0xff]  ;;  %v284_v50 = vld [vmem:[%s1012_s6] sm:$0xff]  ;;  %v286_v51 = vld [vmem:[%s1012_s6 + $0x10] sm:$0xff] }
   0xb   :  { %v280_v52 = vld [vmem:[%s1011_s5] sm:$0xff] }
   0xc   :  { %706 = vmatmul.mubr.msk.f32.gmra.mrb[2].mxu0 %vm69_vm0, %v44_v11  ;;  %716 = vmatprep.mubr.msk.f32.mxu1 %vm308_vm1, %v280_v52  ;;  %v411_v52 = vld [vmem:[%s1014_s8 + $0x8] sm:$0xff] }
  0x83   :  { %v52_v12 = vpop.permute.xlu0 %51 }
  0x84   :  { %v62_v15 = vpop.permute.xlu1 %61 }
  0x87   :  { %v57_v13 = vpop.permute.xlu0 %56 }
  0x88   :  { %v67_v22 = vpop.permute.xlu1 %66 }
  0xdb   :  { %v704_v14 = vpop.f32.mrb[0].mxu0 }
  0xdc   :  { %v154_v16 = vadd.f32 %v704_v14, %v57_v13  ;;  %v148_v17 = vpop.f32.mrb[1].mxu0 }
  0xdd   :  { %v149_v18 = vadd.f32 %v148_v17, %v52_v12 }
  0xde   :  { %177 = vadd.xlane.f32.xlu1 %v154_v16 }
  0xdf   :  { %v707_v19 = vpop.f32.mrb[2].mxu0  ;;  %175 = vadd.xlane.f32.xlu0 %v149_v18 }
  0xe0   :  { %v158_v20 = vpop.f32.mrb[3].mxu0  ;;  %v164_v23 = vadd.f32 %v707_v19, %v67_v22 }
  0xe1   :  { %v159_v21 = vadd.f32 %v158_v20, %v62_v15 }
  0xe3   :  { %179 = vadd.xlane.f32.xlu0 %v159_v21 }
  0xe7   :  { %181 = vadd.xlane.f32.xlu0 %v164_v23 }
  0xef   :  { %222 = vperm.xlu1 %758, %v167_v24  }
  0xf3   :  { %246 = vperm.xlu1 %758, %v171_v25  }
  0xf7   :  { %251 = vperm.xlu1 %758, %v172_v26  }
  0xfb   :  { %237 = vperm.xlu1 %758, %v170_v27  }
  0xfd   :  { %227 = vperm.xlu0 %757, %v168_v28  }
 0x101   :  { %232 = vperm.xlu0 %757, %v169_v29  }
 0x16b   :  { %v178_v30 = vpop.xlane.xlu1 %177 }
 0x16c   :  { %v185_v31 = vmul.f32 0.0078125, %v178_v30  ;;  %v176_v32 = vpop.xlane.xlu0 %175 }
 0x16d   :  { %v184_v33 = vmul.f32 0.0078125, %v176_v32 }
 0x16e   :  { %v189_v34 = vsub.f32 %v154_v16, %v185_v31 }
 0x16f   :  { %v188_v35 = vsub.f32 %v149_v18, %v184_v33  ;;  %v223_v53 = vpop.permute.xlu1 %222 }
 0x170   :  { %v180_v36 = vpop.xlane.xlu0 %179  ;;  %v193_v37 = vmul.f32 %v189_v34, %v189_v34 }
 0x171   :  { %v186_v38 = vmul.f32 0.0078125, %v180_v36  ;;  %v192_v39 = vmul.f32 %v188_v35, %v188_v35  ;;  %v282_v36 = vld [vmem:[%s1011_s5 + $0x10] sm:$0xff] }
 0x172   :  { %198 = vadd.xlane.f32.xlu0 %v193_v37  ;;  %v283_v37 = vld [vmem:[%s1011_s5 + $0x18] sm:$0xff] }
 0x173   :  { %v190_v40 = vsub.f32 %v159_v21, %v186_v38  ;;  %196 = vadd.xlane.f32.xlu1 %v192_v39  ;;  %v247_v54 = vpop.permute.xlu1 %246 }
 0x174   :  { %v182_v41 = vpop.xlane.xlu0 %181 }
 0x175   :  { %v187_v42 = vmul.f32 0.0078125, %v182_v41  ;;  %v194_v43 = vmul.f32 %v190_v40, %v190_v40 }
 0x177   :  { %v191_v44 = vsub.f32 %v164_v23, %v187_v42  ;;  %200 = vadd.xlane.f32.xlu1 %v194_v43  ;;  %v252_v56 = vpop.permute.xlu1 %251 }
 0x179   :  { %v195_v45 = vmul.f32 %v191_v44, %v191_v44 }
 0x17b   :  { %202 = vadd.xlane.f32.xlu0 %v195_v45  ;;  %v238_v58 = vpop.permute.xlu1 %237 }
 0x17c   :  { %v228_v55 = vpop.permute.xlu0 %227 }
 0x180   :  { %v233_v57 = vpop.permute.xlu0 %232 }
 0x188   :  { %261 = vperm.xlu1 %758, %v174_v46  }
 0x18c   :  { %295 = vperm.xlu1 %758, %v285_v47  }
 0x190   :  { %305 = vperm.xlu1 %758, %v287_v48  }
 0x191   :  { %256 = vperm.xlu0 %757, %v173_v49  }
 0x195   :  { %290 = vperm.xlu0 %757, %v284_v50   ;;  %v406_v50 = vld [vmem:[%s1013_s7] sm:$0xff] }
 0x199   :  { %300 = vperm.xlu0 %757, %v286_v51   ;;  %v410_v51 = vld [vmem:[%s1014_s8] sm:$0xff] }
 0x1ff   :  { %v199_v59 = vpop.xlane.xlu0 %198 }
 0x200   :  { %v205_v60 = vmul.f32 0.0078125, %v199_v59  ;;  %v197_v61 = vpop.xlane.xlu1 %196 }
 0x201   :  { %v204_v62 = vmul.f32 0.0078125, %v197_v61 }
 0x202   :  { %v209_v63 = vadd.f32 1e-05, %v205_v60 }
 0x203   :  { %v208_v0 = vadd.f32 1e-05, %v204_v62 }
 0x204   :  { %759 = vrsqrt.f32 %v209_v63  ;;  %v201_v1 = vpop.xlane.xlu1 %200 }
 0x205   :  { %761 = vrsqrt.f32 %v208_v0  ;;  %v206_v2 = vmul.f32 0.0078125, %v201_v1 }
 0x207   :  { %v210_v3 = vadd.f32 1e-05, %v206_v2 }
 0x208   :  { %v203_v4 = vpop.xlane.xlu0 %202  ;;  %v262_v28 = vpop.permute.xlu1 %261 }
 0x209   :  { %763 = vrsqrt.f32 %v210_v3  ;;  %v207_v5 = vmul.f32 0.0078125, %v203_v4 }
 0x20b   :  { %v211_v6 = vadd.f32 1e-05, %v207_v5 }
 0x20c   :  { %v296_v39 = vpop.permute.xlu1 %295 }
 0x20d   :  { %765 = vrsqrt.f32 %v211_v6 }
 0x20e   :  { %v760_v7 = vpop.eup %759 }
 0x20f   :  { %v762_v8 = vpop.eup %761  ;;  %v217_v9 = vmul.f32 %v760_v7, %v189_v34 }
 0x210   :  { %v216_v10 = vmul.f32 %v762_v8, %v188_v35  ;;  %v257_v21 = vpop.permute.xlu0 %256  ;;  %v281_v35 = vld [vmem:[%s1011_s5 + $0x8] sm:$0xff]  ;;  %v306_v48 = vpop.permute.xlu1 %305  ;;  %v413_v8 = vld [vmem:[%s1014_s8 + $0x18] sm:$0xff] }
 0x211   :  { %v241_v11 = vmul.f32 %v228_v55, %v217_v9  ;;  %v408_v55 = vld [vmem:[%s1013_s7 + $0x10] sm:$0xff]  ;;  %v521_v9 = vld [vmem:[%s1016_s10 + $0x8] sm:$0xff] }
 0x212   :  { %v240_v12 = vmul.f32 %v223_v53, %v216_v10  ;;  %v409_v53 = vld [vmem:[%s1013_s7 + $0x18] sm:$0xff]  ;;  %v412_v10 = vld [vmem:[%s1014_s8 + $0x10] sm:$0xff] }
 0x213   :  { %v764_v13 = vpop.eup %763  ;;  %v265_v14 = vadd.f32 %v252_v56, %v241_v11  ;;  %v520_v11 = vld [vmem:[%s1016_s10] sm:$0xff] }
 0x214   :  { %v218_v15 = vmul.f32 %v764_v13, %v190_v40  ;;  %v264_v16 = vadd.f32 %v247_v54, %v240_v12  ;;  %v291_v38 = vpop.permute.xlu0 %290  ;;  %v407_v54 = vld [vmem:[%s1013_s7 + $0x8] sm:$0xff]  ;;  %v518_v12 = vld [vmem:[%s1015_s9] sm:$0xff] }
 0x215   :  { %vm269_vm2 = vcmp.gt.f32.partialorder %v265_v14, 0.0  ;;  %v273_v17 = vmul.f32 0.01, %v265_v14  ;;  %730 = vmatprep.mubr.msk.f32.mxu0 %vm308_vm1, %v518_v12 }
 0x216   :  { %v242_v18 = vmul.f32 %v233_v57, %v218_v15  ;;  %vm268_vm3 = vcmp.gt.f32.partialorder %v264_v16, 0.0  ;;  %v272_v19 = vmul.f32 0.01, %v264_v16 }
 0x217   :  { %v766_v20 = vpop.eup %765  ;;  %v277_v22 = vsel %vm269_vm2, %v265_v14, %v273_v17 }
 0x218   :  { %v219_v23 = vmul.f32 %v766_v20, %v191_v44  ;;  %v266_v24 = vadd.f32 %v257_v21, %v242_v18  ;;  %v276_v25 = vsel %vm268_vm3, %v264_v16, %v272_v19  ;;  %v301_v45 = vpop.permute.xlu0 %300 }
 0x219   :  { %v737_v26 = vpack.c.bf16 %v277_v22, %v276_v25 }
 0x21a   :  { %v243_v27 = vmul.f32 %v238_v58, %v219_v23  ;;  %v274_v29 = vmul.f32 0.01, %v266_v24  ;;  %vm270_vm4 = vcmp.gt.f32.partialorder %v266_v24, 0.0 }
 0x21b   :  { %738 = vmatprep.subr.bf16.mxu1 %v737_v26 }
 0x21c   :  { %740 = vmatpush3.bf16.msra.mxu1 %v737_v26  ;;  %v267_v30 = vadd.f32 %v262_v28, %v243_v27  ;;  %v278_v32 = vsel %vm270_vm4, %v266_v24, %v274_v29 }
 0x21e   :  { %vm271_vm5 = vcmp.gt.f32.partialorder %v267_v30, 0.0  ;;  %v275_v31 = vmul.f32 0.01, %v267_v30 }
 0x220   :  { %v279_v33 = vsel %vm271_vm5, %v267_v30, %v275_v31 }
 0x221   :  { %v741_v34 = vpack.c.bf16 %v279_v33, %v278_v32 }
 0x223   :  { %742 = vmatprep.subr.bf16.mxu1 %v741_v34 }
 0x224   :  { %744 = vmatpush3.bf16.msra.mxu1 %v741_v34 }
 0x227   :  { %717 = vmatmul.mubr.msk.f32.vlgmr.msra.gmra.mrb[0].mxu1 %vm308_vm1, %v281_v35 }
 0x228   :  { %719 = vmatprep.mubr.msk.f32.mxu1 %vm308_vm1, %v282_v36 }
 0x22b   :  { %720 = vmatmul.mubr.msk.f32.gmra.mrb[2].mxu1 %vm308_vm1, %v283_v37 }
 0x2fa   :  { %v718_v40 = vpop.f32.mrb[0].mxu1 }
 0x2fb   :  { %v393_v41 = vadd.f32 %v718_v40, %v296_v39  ;;  %v387_v42 = vpop.f32.mrb[1].mxu1 }
 0x2fc   :  { %v388_v43 = vadd.f32 %v387_v42, %v291_v38 }
 0x2fd   :  { %416 = vadd.xlane.f32.xlu1 %v393_v41 }
 0x2fe   :  { %v721_v44 = vpop.f32.mrb[2].mxu1  ;;  %414 = vadd.xlane.f32.xlu0 %v388_v43 }
 0x2ff   :  { %v397_v46 = vpop.f32.mrb[3].mxu1  ;;  %v403_v49 = vadd.f32 %v721_v44, %v306_v48 }
 0x300   :  { %v398_v47 = vadd.f32 %v397_v46, %v301_v45 }
 0x302   :  { %418 = vadd.xlane.f32.xlu0 %v398_v47 }
 0x306   :  { %420 = vadd.xlane.f32.xlu0 %v403_v49 }
 0x30e   :  { %460 = vperm.xlu1 %758, %v406_v50  }
 0x312   :  { %484 = vperm.xlu1 %758, %v410_v51  }
 0x316   :  { %489 = vperm.xlu1 %758, %v411_v52  }
 0x31a   :  { %475 = vperm.xlu1 %758, %v409_v53  }
 0x31c   :  { %465 = vperm.xlu0 %757, %v407_v54  }
 0x320   :  { %470 = vperm.xlu0 %757, %v408_v55  }
 0x38a   :  { %v417_v56 = vpop.xlane.xlu1 %416 }
 0x38b   :  { %v423_v57 = vmul.f32 0.0078125, %v417_v56  ;;  %v415_v58 = vpop.xlane.xlu0 %414 }
 0x38c   :  { %v422_v59 = vmul.f32 0.0078125, %v415_v58 }
 0x38d   :  { %v427_v60 = vsub.f32 %v393_v41, %v423_v57 }
 0x38e   :  { %v426_v61 = vsub.f32 %v388_v43, %v422_v59  ;;  %v461_v13 = vpop.permute.xlu1 %460  ;;  %v519_v59 = vld [vmem:[%s1015_s9 + $0x8] sm:$0xff]  ;;  %s804_s9 = smov [#allocation2]  }
 0x38f   :  { %v419_v62 = vpop.xlane.xlu0 %418  ;;  %v431_v63 = vmul.f32 %v427_v60, %v427_v60  ;;  %s657_s6 = sshll.u32 %s804_s9, 4  ;;  %s658_s6 = int_to_ptr.vmem [resolvable:$true] %s657_s6 }
 0x390   :  { %v424_v0 = vmul.f32 0.0078125, %v419_v62  ;;  %v430_v1 = vmul.f32 %v426_v61, %v426_v61  ;;  %s779_s18 = scalar_lea.vmem %s658_s6, 512  ;;  %p784_p1 = scmp.lt.s32.totalorder %s658_s6, %s658_s6 }
 0x391   :  { %436 = vadd.xlane.f32.xlu0 %v431_v63  ;;  %p780_p0 = scmp.ne.s32.totalorder %s658_s6, %s779_s18  ;;  %p785_p2 = scmp.lt.s32.totalorder %s779_s18, %s779_s18 }
 0x392   :  { %v428_v2 = vsub.f32 %v398_v47, %v424_v0  ;;  %434 = vadd.xlane.f32.xlu1 %v430_v1  ;;  %v485_v14 = vpop.permute.xlu1 %484 }
 0x393   :  { %v421_v3 = vpop.xlane.xlu0 %420  ;;  %p786_p3 = por %p785_p2, %p784_p1 }
 0x394   :  { %v425_v4 = vmul.f32 0.0078125, %v421_v3  ;;  %v432_v5 = vmul.f32 %v428_v2, %v428_v2 }
 0x395   :  { %p787_p4 = pnand %p786_p3, %p780_p0 }
 0x396   :  { %v429_v6 = vsub.f32 %v403_v49, %v425_v4  ;;  %438 = vadd.xlane.f32.xlu1 %v432_v5  ;;  %v490_v16 = vpop.permute.xlu1 %489 }
 0x398   :  { %v433_v7 = vmul.f32 %v429_v6, %v429_v6 }
 0x39a   :  { %440 = vadd.xlane.f32.xlu0 %v433_v7  ;;  %v476_v18 = vpop.permute.xlu1 %475 }
 0x39b   :  { %v466_v15 = vpop.permute.xlu0 %465 }
 0x39f   :  { %v471_v17 = vpop.permute.xlu0 %470 }
 0x3a7   :  { %499 = vperm.xlu1 %758, %v413_v8  }
 0x3ab   :  { %529 = vperm.xlu1 %758, %v521_v9  }
 0x3b0   :  { %494 = vperm.xlu0 %757, %v412_v10  }
 0x3b4   :  { %524 = vperm.xlu0 %757, %v520_v11  }
 0x41e   :  { %v437_v19 = vpop.xlane.xlu0 %436 }
 0x41f   :  { %v443_v20 = vmul.f32 0.0078125, %v437_v19  ;;  %v435_v21 = vpop.xlane.xlu1 %434 }
 0x420   :  { %v442_v22 = vmul.f32 0.0078125, %v435_v21 }
 0x421   :  { %v447_v23 = vadd.f32 1e-05, %v443_v20 }
 0x422   :  { %v446_v24 = vadd.f32 1e-05, %v442_v22 }
 0x423   :  { %767 = vrsqrt.f32 %v447_v23  ;;  %v439_v25 = vpop.xlane.xlu1 %438 }
 0x424   :  { %769 = vrsqrt.f32 %v446_v24  ;;  %v444_v26 = vmul.f32 0.0078125, %v439_v25 }
 0x426   :  { %v448_v27 = vadd.f32 1e-05, %v444_v26 }
 0x427   :  { %v441_v28 = vpop.xlane.xlu0 %440  ;;  %v500_v52 = vpop.permute.xlu1 %499 }
 0x428   :  { %771 = vrsqrt.f32 %v448_v27  ;;  %v445_v29 = vmul.f32 0.0078125, %v441_v28 }
 0x42a   :  { %v449_v30 = vadd.f32 1e-05, %v445_v29 }
 0x42b   :  { %v530_v62 = vpop.permute.xlu1 %529 }
 0x42c   :  { %773 = vrsqrt.f32 %v449_v30 }
 0x42d   :  { %v768_v31 = vpop.eup %767 }
 0x42e   :  { %v770_v32 = vpop.eup %769  ;;  %v455_v33 = vmul.f32 %v768_v31, %v427_v60  ;;  %v613_v60 = vlaneseq }
 0x42f   :  { %v454_v34 = vmul.f32 %v770_v32, %v426_v61  ;;  %v495_v45 = vpop.permute.xlu0 %494 }
 0x430   :  { %v479_v35 = vmul.f32 %v466_v15, %v455_v33  ;;  %v614_v61 = vshrl.u32 %v613_v60, 7 }
 0x431   :  { %v478_v36 = vmul.f32 %v461_v13, %v454_v34 }
 0x432   :  { %v772_v37 = vpop.eup %771  ;;  %v503_v38 = vadd.f32 %v490_v16, %v479_v35  ;;  %vm616_vm10 = vcmp.lt.s32.totalorder %v614_v61, 6 }
 0x433   :  { %v456_v39 = vmul.f32 %v772_v37, %v428_v2  ;;  %v502_v40 = vadd.f32 %v485_v14, %v478_v36  ;;  %v525_v0 = vpop.permute.xlu0 %524 }
 0x434   :  { %vm507_vm6 = vcmp.gt.f32.partialorder %v503_v38, 0.0  ;;  %v511_v41 = vmul.f32 0.01, %v503_v38 }
 0x435   :  { %v480_v42 = vmul.f32 %v471_v17, %v456_v39  ;;  %vm506_vm7 = vcmp.gt.f32.partialorder %v502_v40, 0.0  ;;  %v510_v43 = vmul.f32 0.01, %v502_v40 }
 0x436   :  { %v774_v44 = vpop.eup %773  ;;  %v515_v46 = vsel %vm507_vm6, %v503_v38, %v511_v41 }
 0x437   :  { %v457_v47 = vmul.f32 %v774_v44, %v429_v6  ;;  %v504_v48 = vadd.f32 %v495_v45, %v480_v42  ;;  %v514_v49 = vsel %vm506_vm7, %v502_v40, %v510_v43 }
 0x438   :  { %v745_v50 = vpack.c.bf16 %v515_v46, %v514_v49 }
 0x439   :  { %v481_v51 = vmul.f32 %v476_v18, %v457_v47  ;;  %v512_v53 = vmul.f32 0.01, %v504_v48  ;;  %vm508_vm8 = vcmp.gt.f32.partialorder %v504_v48, 0.0 }
 0x43a   :  { %746 = vmatprep.subr.bf16.mxu0 %v745_v50 }
 0x43b   :  { %748 = vmatpush3.bf16.msra.mxu0 %v745_v50  ;;  %v505_v54 = vadd.f32 %v500_v52, %v481_v51  ;;  %v516_v56 = vsel %vm508_vm8, %v504_v48, %v512_v53 }
 0x43d   :  { %vm509_vm9 = vcmp.gt.f32.partialorder %v505_v54, 0.0  ;;  %v513_v55 = vmul.f32 0.01, %v505_v54 }
 0x43f   :  { %v517_v57 = vsel %vm509_vm9, %v505_v54, %v513_v55 }
 0x440   :  { %v749_v58 = vpack.c.bf16 %v517_v57, %v516_v56 }
 0x442   :  { %750 = vmatprep.subr.bf16.mxu0 %v749_v58 }
 0x443   :  { %752 = vmatpush3.bf16.msra.mxu0 %v749_v58 }
 0x446   :  { %731 = vmatmul.mubr.msk.f32.vlgmr.msra.gmra.mrb[4].mxu0 %vm308_vm1, %v519_v59 }
 0x519   :  { %v732_v63 = vpop.f32.mrb[4].mxu0 }
 0x51a   :  { %v610_v1 = vadd.f32 %v732_v63, %v530_v62  ;;  %v604_v2 = vpop.f32.mrb[5].mxu0 }
 0x51b   :  { %v605_v3 = vadd.f32 %v604_v2, %v525_v0 }
 0x51c   :  { %648 = vst [vmem:[#allocation2 + $0x8] sm:$0xff] %v610_v1  ;;  %651 = vst [vmem:[#allocation2 + $0x18] sm:$0xff] %v610_v1 }
 0x51d   :  { %v618_v4 = vsel %vm616_vm10, %v605_v3, -1e+30  ;;  %647 = vst [vmem:[#allocation2] sm:$0xff] %v605_v3 }
 0x51e   :  { %v620_v5 = vmax.f32 %v618_v4, -1e+30 }
 0x520   :  { %v621_v6 = vrot.slane %v620_v5, 4 }
 0x522   :  { %v622_v7 = vmax.f32 %v620_v5, %v621_v6 }
 0x524   :  { %v623_v8 = vrot.slane %v622_v7, 2 }
 0x526   :  { %v624_v9 = vmax.f32 %v622_v7, %v623_v8 }
 0x528   :  { %v625_v10 = vrot.slane %v624_v9, 1 }
 0x52a   :  { %v626_v11 = vmax.f32 %v624_v9, %v625_v10 }
 0x52c   :  { %v627_v12 = vsub.f32 %v618_v4, %v626_v11 }
 0x52e   :  { %v629_v13 = vmul.f32 1.442695, %v627_v12 }
 0x530   :  { %775 = vpow2.f32 %v629_v13 }
 0x53a   :  { %v776_v14 = vpop.eup %775 }
 0x53b   :  { %v633_v15 = vsel %vm616_vm10, %v776_v14, 0.0 }
 0x53c   :  { %v636_v16 = vrot.slane %v633_v15, 4 }
 0x53e   :  { %v637_v17 = vadd.f32 %v636_v16, %v633_v15 }
 0x540   :  { %v638_v18 = vrot.slane %v637_v17, 2 }
 0x542   :  { %v639_v19 = vadd.f32 %v638_v18, %v637_v17 }
 0x544   :  { %v640_v20 = vrot.slane %v639_v19, 1 }
 0x546   :  { %v641_v21 = vadd.f32 %v640_v20, %v639_v19 }
 0x548   :  { %777 = vrcp.f32 %v641_v21 }
 0x552   :  { %v778_v22 = vpop.eup %777 }
 0x553   :  { %v643_v23 = vmul.f32 %v778_v22, %v633_v15 }
 0x555   :  { %v645_v24 = vsel %vm616_vm10, %v643_v23, %v605_v3 }
 0x556   :  { %650 = vst [vmem:[#allocation2 + $0x10] sm:$0xff] %v645_v24 }
 0x557   :  { %790 = shalt.err (!%p787_p4)
}
 0x558   :  { %s791_s21 = scalar_lea.hbm %s1017_s11, 512 }
 0x559   :  { %p792_p5 = scmp.ne.s32.totalorder %s1017_s11, %s791_s21  ;;  %p795_p6 = scmp.lt.u32.totalorder %s791_s21, %s1017_s11 }
 0x55b   :  { %p797_p7 = pnand %p795_p6, %p792_p5 }
 0x55d   :  { %800 = shalt.err (!%p797_p7)
}
 0x55e   :  { %s805_s25 = smov 128   ;;  %s806_s26 = smov 8  }
 0x55f   :  { %663 = dma.vmem_to_hbm [thread:$0]  %s658_s6, 512, %s1017_s11, [#allocation3], %s805_s25, %s805_s25, %s806_s26  }
 0x560   :  { %801 = dma.done.wait [#allocation3], 512  }
 0x561   :  { %802 = vsyncadd [#allocation3], 4294966784 }
 0x562   :  { %667 = vsyncpa [#allocation3], 1 }

</bundles_post_ra>
